<compile_context>
chip_gen: v7x
topology: tpu7x:2x2x1
jax: 0.10.0
libtpu: 0.0.40
codegen_flags: <defaults>
</compile_context>

<pallas_src>
import jax
import jax.numpy as jnp
from jax.experimental import pallas as pl
from jax.experimental.pallas import tpu as pltpu


_TB_CAP = 512                      # nb == 1 (weight read exactly once) for B <= 512
_VMEM_BUDGET = 40 * 1024 * 1024    # fits v7x's 64 MiB/TC with headroom; v5e/v6e have 128 MiB


def _round_up(x: int, m: int) -> int:
    return ((x + m - 1) // m) * m


def _vmem_need(tb: int, tk: int, d: int, cp: int) -> int:
    """Conservative VMEM footprint estimate for the chosen tiling."""
    wd = 2 * tk * d * 2       # dense-weight K chunk, double-buffered bf16
    x = 2 * tb * tk * 2       # activation K chunk, double-buffered bf16
    wo = 2 * d * cp * 2       # out_proj weight (resident; count 2x to be safe)
    bias = 2 * (d + cp) * 4   # biases
    acc = tb * d * 4          # f32 accumulator scratch
    out = 2 * tb * cp * 4     # logits tile, double-buffered f32
    return wd + x + wo + bias + acc + out


def _pick_tile_k(d: int, tb: int, cp: int, budget: int) -> int:
    """K-tile size: VMEM-budget-driven, biased toward few large steps."""
    if d % 128 != 0:
        # Lane constraint: a partial last-dim block must equal the full dim.
        return d
    divs = [t for t in range(128, d // 2 + 1, 128) if d % t == 0]
    if d <= 1536 or not divs:
        # Single K step: per-grid-step overhead (~0.35 us) would otherwise
        # dominate the us-scale weight DMA.
        if _vmem_need(tb, d, d, cp) <= budget:
            return d
    # >= 2 K steps so the next weight chunk's DMA pipelines under the MXU,
    # with chunks as large as the VMEM budget allows.
    for tk in sorted(divs, reverse=True):
        if _vmem_need(tb, tk, d, cp) <= budget:
            return tk
    return 128


def _head_kernel(x_ref, wd_ref, bd_ref, wo_ref, bo_ref, o_ref, acc_ref):
    # x_ref : [tb, tk]  bf16  CLS-token activations, K chunk
    # wd_ref: [tk, D ]  bf16  dense weight, [in, out] layout, K chunk
    # bd_ref: [1,  D ]  f32   dense bias
    # wo_ref: [D,  Cp]  bf16  out_proj weight, [in, out] layout (C padded)
    # bo_ref: [1,  Cp]  f32   out_proj bias (C padded)
    # o_ref : [tb, Cp]  f32   logits (written only on the last K step)
    # acc_ref:[tb, D ]  f32   dense-layer accumulator (VMEM scratch)
    k = pl.program_id(1)

    @pl.when(k == 0)
    def _init():
        # Fold the dense bias into the accumulator init (saves a VALU pass).
        acc_ref[...] = jnp.broadcast_to(bd_ref[...], acc_ref.shape)

    # Standard [M, K] x [K, N] contraction; bf16 into the MXU, f32 accumulate.
    acc_ref[...] += jnp.dot(x_ref[...], wd_ref[...],
                            preferred_element_type=jnp.float32)

    @pl.when(k == pl.num_programs(1) - 1)
    def _finalize():
        h = jnp.tanh(acc_ref[...])                      # tanh in f32
        # TODO(synk): if this head is ever used with C in the thousands,
        # K-tile wo like wd and accumulate logits in a (tb, Cp) scratch
        # instead of keeping the full (D, Cp) block resident.
        logits = jnp.dot(h.astype(jnp.bfloat16), wo_ref[...],
                         preferred_element_type=jnp.float32) + bo_ref[...]
        o_ref[...] = logits.astype(o_ref.dtype)


def prepare_esm2_head_params(w_dense, b_dense, w_out, b_out):
    """One-time weight preparation. Call once, reuse for every forward call.

    w_dense: [D, D] (PyTorch [out, in]); b_dense: [D];
    w_out:   [C, D] (PyTorch [out, in]); b_out:   [C].
    Returns (wd_t [D,D] bf16, bd [1,D] f32, wo_t [D,Cp] bf16, bo [1,Cp] f32, C).
    """
    D = w_dense.shape[1]
    C = w_out.shape[0]
    Cp = _round_up(C, 128)
    wd_t = w_dense.T.astype(jnp.bfloat16)                              # [in, out]
    wo_t = (jnp.zeros((D, Cp), jnp.bfloat16)
            .at[:, :C].set(w_out.T.astype(jnp.bfloat16)))              # [in, out] padded
    bd = b_dense.reshape(1, D).astype(jnp.float32)
    bo = jnp.zeros((1, Cp), jnp.float32).at[0, :C].set(b_out.astype(jnp.float32))
    return wd_t, bd, wo_t, bo, C


def esm2_classification_head_apply(features, params):
    """Forward pass with pre-prepared parameters. features: [B, T, D] f32."""
    wd_t, bd, wo_t, bo, num_classes = params
    B, _, D = features.shape
    Cp = wo_t.shape[1]

    # CLS-token pick + bf16 cast + batch pad (cheap: O(B*D) vs O(D*D) weights).
    # TODO(synk): fold the CLS pick into the kernel's own input DMA (index_map
    # over the T axis) to drop this extra HBM pass for latency-critical serving.
    x = features[:, 0, :].astype(jnp.bfloat16)

    tb = _round_up(max(B, 8), 8) if B <= _TB_CAP else _TB_CAP
    Bp = _round_up(B, tb)
    nb = Bp // tb

    tk = _pick_tile_k(D, tb, Cp, _VMEM_BUDGET)
    nk = D // tk

    x_pad = x if Bp == B else jnp.zeros((Bp, D), jnp.bfloat16).at[:B].set(x)

    vmem_need = _vmem_need(tb, tk, D, Cp)
    vmem_limit = min(max(32 * 1024 * 1024, vmem_need + (4 << 20)),
                     56 * 1024 * 1024)

    cost = pl.CostEstimate(
        flops=2 * Bp * D * D + 2 * Bp * D * Cp,
        transcendentals=Bp * D,
        bytes_accessed=(x_pad.size * 2            # activations (bf16), streamed once
                        + nb * wd_t.size * 2      # dense weight, re-streamed per batch tile
                        + wo_t.size * 2           # out_proj weight: constant block, fetched once
                        + bd.size * 4 + bo.size * 4
                        + Bp * Cp * 4),           # logits writeback
    )

    out = pl.pallas_call(
        _head_kernel,
        out_shape=jax.ShapeDtypeStruct((Bp, Cp), jnp.float32),
        grid_spec=pltpu.PrefetchScalarGridSpec(
            num_scalar_prefetch=0,
            grid=(nb, nk),                                    # reduction (K) axis last
            in_specs=[
                pl.BlockSpec((tb, tk), lambda b, k: (b, k)),  # x        [tb, tk]
                pl.BlockSpec((tk, D), lambda b, k: (k, 0)),   # dense W  [tk, D]
                pl.BlockSpec((1, D), lambda b, k: (0, 0)),    # dense b
                pl.BlockSpec((D, Cp), lambda b, k: (0, 0)),   # out W (resident)
                pl.BlockSpec((1, Cp), lambda b, k: (0, 0)),   # out b
            ],
            out_specs=pl.BlockSpec((tb, Cp), lambda b, k: (b, 0)),
            scratch_shapes=[pltpu.VMEM((tb, D), jnp.float32)],
        ),
        compiler_params=pltpu.CompilerParams(
            # Weight-DMA-bound kernel: keep both axes "arbitrary" so megacore
            # (v7x) never splits batch tiles across TensorCores, which would
            # duplicate the D x D weight DMA on a shared HBM. nb == 1 anyway
            # for B <= 512.
            dimension_semantics=("arbitrary", "arbitrary"),
            vmem_limit_bytes=vmem_limit,
        ),
        cost_estimate=cost,
    )(x_pad, wd_t, bd, wo_t, bo)

    return out[:B, :num_classes]


def esm2_classification_head(features, w_dense, b_dense, w_out, b_out):
    """Convenience wrapper taking PyTorch-layout weights (prep done per call).

    For repeated calls, use prepare_esm2_head_params() once and
    esm2_classification_head_apply() per call.
    """
    params = prepare_esm2_head_params(w_dense, b_dense, w_out, b_out)
    return esm2_classification_head_apply(features, params)


def _reference(features, w_dense, b_dense, w_out, b_out):
    x = features[:, 0, :]
    x = jnp.tanh(x @ w_dense.T + b_dense)
    return x @ w_out.T + b_out


if __name__ == "__main__":
    def run_case(B, T, D, C, key):
        k_feat, k_wd, k_bd, k_wo, k_bo = jax.random.split(key, 5)
        features = jax.random.normal(k_feat, (B, T, D), dtype=jnp.float32)
        bound = 1.0 / (D ** 0.5)   # Linear-style init U(-1/sqrt(in), 1/sqrt(in))
        w_dense = jax.random.uniform(k_wd, (D, D), minval=-bound, maxval=bound,
                                     dtype=jnp.float32)
        b_dense = jax.random.uniform(k_bd, (D,), minval=-bound, maxval=bound,
                                     dtype=jnp.float32)
        w_out = jax.random.uniform(k_wo, (C, D), minval=-bound, maxval=bound,
                                   dtype=jnp.float32)
        b_out = jax.random.uniform(k_bo, (C,), minval=-bound, maxval=bound,
                                   dtype=jnp.float32)

        params = prepare_esm2_head_params(w_dense, b_dense, w_out, b_out)
        logits = jax.block_until_ready(
            esm2_classification_head_apply(features, params))

        ref = _reference(features, w_dense, b_dense, w_out, b_out)
        assert logits.shape == (B, C)
        # Tolerance accounts for bf16 weights *and* activations into the MXU
        # (accumulation is f32).
        assert jnp.allclose(logits, ref, atol=5e-2, rtol=5e-2), \
            f"mismatch vs reference at shape {(B, T, D, C)}"

    key = jax.random.PRNGKey(0)
    k_small, k_tiled = jax.random.split(key)

    # Small shape (module defaults: num_classes=2).
    run_case(B=2, T=8, D=32, C=2, key=k_small)
    # Moderate shape exercising (8,128) tiling, B/C padding, and the K-tiled
    # accumulator path (D > 1536 -> nk >= 2).
    run_case(B=12, T=4, D=2048, C=5, key=k_tiled)

    print("KERNEL_OK")
</pallas_src>

<mosaic_0001>
module attributes {stable_mosaic.version = 11 : i64} {
  func.func @_head_kernel(%arg0: i32, %arg1: i32, %arg2: memref<8x32xbf16, #tpu.memory_space<vmem>>, %arg3: memref<32x32xbf16, #tpu.memory_space<vmem>>, %arg4: memref<1x32xf32, #tpu.memory_space<vmem>>, %arg5: memref<32x128xbf16, #tpu.memory_space<vmem>>, %arg6: memref<1x128xf32, #tpu.memory_space<vmem>>, %arg7: memref<8x128xf32, #tpu.memory_space<vmem>>, %arg8: memref<8x32xf32, #tpu.memory_space<vmem>>) attributes {dimension_semantics = [#tpu.dimension_semantics<arbitrary>, #tpu.dimension_semantics<arbitrary>], iteration_bounds = array<i64: 1, 1>, scalar_prefetch = 0 : i64, scratch_operands = 1 : i64, tpu.core_type = #tpu.core_type<tc>, window_params = [{transform_indices = @transform_0, window_bounds = array<i64: 8, 32>}, {transform_indices = @transform_1, window_bounds = array<i64: 32, 32>}, {pipeline_mode = #tpu.pipeline_mode<synchronous>, transform_indices = @transform_2, window_bounds = array<i64: 1, 32>}, {pipeline_mode = #tpu.pipeline_mode<synchronous>, transform_indices = @transform_3, window_bounds = array<i64: 32, 128>}, {pipeline_mode = #tpu.pipeline_mode<synchronous>, transform_indices = @transform_4, window_bounds = array<i64: 1, 128>}, {transform_indices = @transform_5, window_bounds = array<i64: 8, 128>}]} {
    %c0_i32 = arith.constant 0 : i32
    %0 = arith.cmpi eq, %arg1, %c0_i32 : i32
    %1 = arith.extui %0 : i1 to i32
    %c0_i32_0 = arith.constant 0 : i32
    %2 = arith.cmpi ne, %1, %c0_i32_0 : i32
    scf.if %2 {
      %c0_10 = arith.constant 0 : index
      %c0_11 = arith.constant 0 : index
      %12 = vector.load %arg4[%c0_10, %c0_11] : memref<1x32xf32, #tpu.memory_space<vmem>>, vector<1x32xf32>
      %13 = vector.shape_cast %12 : vector<1x32xf32> to vector<1x32xf32>
      %14 = vector.broadcast %13 : vector<1x32xf32> to vector<8x32xf32>
      %c0_12 = arith.constant 0 : index
      %c0_13 = arith.constant 0 : index
      %15 = vector.load %arg8[%c0_12, %c0_13] : memref<8x32xf32, #tpu.memory_space<vmem>>, vector<8x32xf32>
      tpu.vector_store %arg8[%c0_12, %c0_13], %14 {strides = array<i32>} : memref<8x32xf32, #tpu.memory_space<vmem>>, vector<8x32xf32>,
    } else {
    }
    %c0 = arith.constant 0 : index
    %c0_1 = arith.constant 0 : index
    %3 = vector.load %arg8[%c0, %c0_1] : memref<8x32xf32, #tpu.memory_space<vmem>>, vector<8x32xf32>
    %c0_2 = arith.constant 0 : index
    %c0_3 = arith.constant 0 : index
    %4 = vector.load %arg2[%c0_2, %c0_3] : memref<8x32xbf16, #tpu.memory_space<vmem>>, vector<8x32xbf16>
    %c0_4 = arith.constant 0 : index
    %c0_5 = arith.constant 0 : index
    %5 = vector.load %arg3[%c0_4, %c0_5] : memref<32x32xbf16, #tpu.memory_space<vmem>>, vector<32x32xbf16>
    %cst = arith.constant dense<0.000000e+00> : vector<8x32xf32>
    %6 = tpu.matmul %4, %5, %cst {dimension_numbers = #tpu.dot_dimension_numbers<[1], [0], [0], [1], [0, 0, 1, 1], [], []>} : vector<8x32xbf16>, vector<32x32xbf16>, vector<8x32xf32> -> vector<8x32xf32>
    %7 = arith.addf %3, %6 : vector<8x32xf32>
    %c0_6 = arith.constant 0 : index
    %c0_7 = arith.constant 0 : index
    %8 = vector.load %arg8[%c0_6, %c0_7] : memref<8x32xf32, #tpu.memory_space<vmem>>, vector<8x32xf32>
    tpu.vector_store %arg8[%c0_6, %c0_7], %7 {strides = array<i32>} : memref<8x32xf32, #tpu.memory_space<vmem>>, vector<8x32xf32>,
    %c0_i32_8 = arith.constant 0 : i32
    %9 = arith.cmpi eq, %arg1, %c0_i32_8 : i32
    %10 = arith.extui %9 : i1 to i32
    %c0_i32_9 = arith.constant 0 : i32
    %11 = arith.cmpi ne, %10, %c0_i32_9 : i32
    scf.if %11 {
      %c0_10 = arith.constant 0 : index
      %c0_11 = arith.constant 0 : index
      %12 = vector.load %arg8[%c0_10, %c0_11] : memref<8x32xf32, #tpu.memory_space<vmem>>, vector<8x32xf32>
      %13 = math.tanh %12 : vector<8x32xf32>
      %14 = arith.truncf %13 : vector<8x32xf32> to vector<8x32xbf16>
      %c0_12 = arith.constant 0 : index
      %c0_13 = arith.constant 0 : index
      %15 = vector.load %arg5[%c0_12, %c0_13] : memref<32x128xbf16, #tpu.memory_space<vmem>>, vector<32x128xbf16>
      %cst_14 = arith.constant dense<0.000000e+00> : vector<8x128xf32>
      %16 = tpu.matmul %14, %15, %cst_14 {dimension_numbers = #tpu.dot_dimension_numbers<[1], [0], [0], [1], [0, 0, 1, 1], [], []>} : vector<8x32xbf16>, vector<32x128xbf16>, vector<8x128xf32> -> vector<8x128xf32>
      %c0_15 = arith.constant 0 : index
      %c0_16 = arith.constant 0 : index
      %17 = vector.load %arg6[%c0_15, %c0_16] : memref<1x128xf32, #tpu.memory_space<vmem>>, vector<1x128xf32>
      %18 = vector.broadcast %17 : vector<1x128xf32> to vector<8x128xf32>
      %19 = arith.addf %16, %18 : vector<8x128xf32>
      %c0_17 = arith.constant 0 : index
      %c0_18 = arith.constant 0 : index
      %20 = vector.load %arg7[%c0_17, %c0_18] : memref<8x128xf32, #tpu.memory_space<vmem>>, vector<8x128xf32>
      tpu.vector_store %arg7[%c0_17, %c0_18], %19 {strides = array<i32>} : memref<8x128xf32, #tpu.memory_space<vmem>>, vector<8x128xf32>,
    } else {
    }
    return
  }
  func.func @transform_0(%arg0: i32, %arg1: i32) -> (i32, i32) {
    %c0_i32 = arith.constant 0 : i32
    return %arg0, %arg1 : i32, i32
  }
  func.func @transform_1(%arg0: i32, %arg1: i32) -> (i32, i32) {
    %c0_i32 = arith.constant 0 : i32
    %c0_i32_0 = arith.constant 0 : i32
    return %arg1, %c0_i32 : i32, i32
  }
  func.func @transform_2(%arg0: i32, %arg1: i32) -> (i32, i32) {
    %c0_i32 = arith.constant 0 : i32
    %c0_i32_0 = arith.constant 0 : i32
    %c0_i32_1 = arith.constant 0 : i32
    return %c0_i32, %c0_i32_0 : i32, i32
  }
  func.func @transform_3(%arg0: i32, %arg1: i32) -> (i32, i32) {
    %c0_i32 = arith.constant 0 : i32
    %c0_i32_0 = arith.constant 0 : i32
    %c0_i32_1 = arith.constant 0 : i32
    return %c0_i32, %c0_i32_0 : i32, i32
  }
  func.func @transform_4(%arg0: i32, %arg1: i32) -> (i32, i32) {
    %c0_i32 = arith.constant 0 : i32
    %c0_i32_0 = arith.constant 0 : i32
    %c0_i32_1 = arith.constant 0 : i32
    return %c0_i32, %c0_i32_0 : i32, i32
  }
  func.func @transform_5(%arg0: i32, %arg1: i32) -> (i32, i32) {
    %c0_i32 = arith.constant 0 : i32
    %c0_i32_0 = arith.constant 0 : i32
    return %arg0, %c0_i32 : i32, i32
  }
}

</mosaic_0001>

<bundles_post_ra>
// kernel: tpu_custom_call.1
= control target key start
LH: loop header
LB: loop body
LE: loop exit
PB: predicated region body
PF: predicated region fallthrough
CT: control target
= control target key end

     0   :  { %10 = vsyncpa [#allocation4], 0  ;;  %s467_s0 = inlined_call_operand.hbm [shape: bf16[8,32], index: 0, kind: input, shape index: {}]   ;;  %s468_s1 = inlined_call_operand.hbm [shape: bf16[32,32], index: 1, kind: input, shape index: {}]   ;;  %s469_s2 = inlined_call_operand.vmem [shape: f32[1,32], index: 2, kind: input, shape index: {}]   ;;  %s470_s3 = inlined_call_operand.hbm [shape: bf16[32,128], index: 3, kind: input, shape index: {}]   ;;  %s471_s4 = inlined_call_operand.vmem [shape: f32[1,128], index: 4, kind: input, shape index: {}]   ;;  %s472_s5 = inlined_call_operand.hbm [shape: f32[8,128], index: 5, kind: output, shape index: {}]  }
   0x1   :  { %11 = vsyncpa [#allocation7], 0 }
   0x2   :  { %12 = vsyncpa [#allocation5], 0  ;;  %s365_s18 = smov [#allocation6]   ;;  %s271_s22 = scalar_lea.hbm %s468_s1, 256 }
   0x3   :  { %s28_s19 = sshll.u32 %s365_s18, 4  ;;  %p272_p0 = scmp.ne.s32.totalorder %s468_s1, %s271_s22  ;;  %s29_s19 = int_to_ptr.vmem [resolvable:$true] %s28_s19 }
   0x4   :  { %p275_p1 = scmp.lt.u32.totalorder %s271_s22, %s468_s1 }
   0x6   :  { %p277_p2 = pnand %p275_p1, %p272_p0 }
   0x8   :  { %280 = shalt.err (!%p277_p2)
}
   0x9   :  { %s281_s27 = scalar_lea.vmem %s29_s19, 256  ;;  %p286_p4 = scmp.lt.s32.totalorder %s29_s19, %s29_s19 }
   0xa   :  { %p282_p3 = scmp.ne.s32.totalorder %s29_s19, %s281_s27  ;;  %p287_p5 = scmp.lt.s32.totalorder %s281_s27, %s281_s27 }
   0xc   :  { %p288_p6 = por %p287_p5, %p286_p4 }
   0xe   :  { %p289_p7 = pnand %p288_p6, %p282_p3 }
  0x10   :  { %292 = shalt.err (!%p289_p7)
}
  0x11   :  { %s366_s28 = smov 64   ;;  %s367_s29 = smov 4  }
  0x12   :  { %34 = dma.hbm_to_vmem [thread:$0]  %s468_s1, 256, %s29_s19, [#allocation7], %s366_s28, %s366_s28, %s367_s29  }
  0x13   :  { %s368_s7 = smov [#allocation3]   ;;  %s369_s9 = smov [#allocation8]  }
  0x14   :  { %s19_s8 = sshll.u32 %s368_s7, 4  ;;  %s42_s10 = sshll.u32 %s369_s9, 4  ;;  %s20_s8 = int_to_ptr.vmem [resolvable:$true] %s19_s8  ;;  %s43_s10 = int_to_ptr.vmem [resolvable:$true] %s42_s10 }
  0x15   :  { %s293_s13 = scalar_lea.hbm %s467_s0, 64 }
  0x16   :  { %p294_p8 = scmp.ne.s32.totalorder %s467_s0, %s293_s13  ;;  %p297_p9 = scmp.lt.u32.totalorder %s293_s13, %s467_s0 }
  0x18   :  { %p299_p10 = pnand %p297_p9, %p294_p8 }
  0x1a   :  { %302 = shalt.err (!%p299_p10)
}
  0x1b   :  { %s303_s1 = scalar_lea.vmem %s20_s8, 64  ;;  %p308_p12 = scmp.lt.s32.totalorder %s20_s8, %s20_s8 }
  0x1c   :  { %p304_p11 = scmp.ne.s32.totalorder %s20_s8, %s303_s1  ;;  %p309_p13 = scmp.lt.s32.totalorder %s303_s1, %s303_s1 }
  0x1e   :  { %p310_p0 = por %p309_p13, %p308_p12 }
  0x20   :  { %p311_p1 = pnand %p310_p0, %p304_p11 }
  0x22   :  { %314 = shalt.err (!%p311_p1)
}
  0x23   :  { %22 = dma.hbm_to_vmem [thread:$0]  %s467_s0, 64, %s20_s8, [#allocation4]  }
  0x24   :  { %s315_s22 = scalar_lea.hbm %s470_s3, 256 }
  0x25   :  { %p316_p2 = scmp.ne.s32.totalorder %s470_s3, %s315_s22  ;;  %p319_p3 = scmp.lt.u32.totalorder %s315_s22, %s470_s3 }
  0x27   :  { %p321_p4 = pnand %p319_p3, %p316_p2 }
  0x29   :  { %324 = shalt.err (!%p321_p4)
}
  0x2a   :  { %s325_s27 = scalar_lea.vmem %s43_s10, 256  ;;  %p330_p6 = scmp.lt.s32.totalorder %s43_s10, %s43_s10 }
  0x2b   :  { %p326_p5 = scmp.ne.s32.totalorder %s43_s10, %s325_s27  ;;  %p331_p7 = scmp.lt.s32.totalorder %s325_s27, %s325_s27 }
  0x2d   :  { %p332_p8 = por %p331_p7, %p330_p6 }
  0x2f   :  { %p333_p9 = pnand %p332_p8, %p326_p5 }
  0x31   :  { %336 = shalt.err (!%p333_p9)
}
  0x32   :  { %48 = dma.hbm_to_vmem [thread:$0]  %s470_s3, 256, %s43_s10, [#allocation7], %s366_s28, %s366_s28, %s367_s29  }
  0x33   :  { %359 = dma.done.wait [#allocation4], 64  }
  0x34   :  { %360 = vsyncadd [#allocation4], 4294967232 }
  0x35   :  { %361 = dma.done.wait [#allocation7], 512  }
  0x36   :  { %362 = vsyncadd [#allocation7], 4294966784  ;;  %v370_v0 = vmov 0.0   ;;  %vm371_vm0 = vmmov 0   ;;  %v265_v1 = vld [vmem:[#allocation6] sm:$0xff]   ;;  %v266_v2 = vld [vmem:[#allocation6 + $0x8] sm:$0xff]  }
  0x37   :  { %241 = vmatprep.subr.bf16.mxu0 %v370_v0  ;;  %245 = vmatprep.mubr.msk.bf16.mxu0 %vm371_vm0, %v370_v0  ;;  %v227_v3 = vld [vmem:[%s469_s2] ss:$0 sm:$0xff]  ;;  %vm72_vm1 = vcmask 261120   ;;  %v75_v4 = vld [vmem:[#allocation3] sm:$0xf]  ;;  %s372_s28 = smov [#allocation9]  }
  0x38   :  { %249 = vmatprep.subr.bf16.mxu1 %v370_v0  ;;  %253 = vmatprep.mubr.msk.bf16.mxu1 %vm371_vm0, %v370_v0  ;;  %73 = vst.msk [vmem:[#allocation2] sm:$0xff] %vm72_vm1, %v227_v3  ;;  %v267_v5 = vld [vmem:[#allocation8] sm:$0xff]   ;;  %v268_v6 = vld [vmem:[#allocation8 + $0x8] sm:$0xff]   ;;  %s217_s29 = sshll.u32 %s372_s28, 4  ;;  %s218_s29 = int_to_ptr.vmem [resolvable:$true] %s217_s29 }
  0x39   :  { %242 = vmatpush3.bf16.msra.mxu0 %v265_v1  ;;  %250 = vmatpush3.bf16.msra.mxu1 %v267_v5  ;;  %v231_v16 = vld [vmem:[%s471_s4] ss:$0 sm:$0xff]  ;;  %s337_s8 = scalar_lea.vmem %s218_s29, 128  ;;  %p342_p11 = scmp.lt.s32.totalorder %s218_s29, %s218_s29 }
  0x3a   :  { %243 = vmatprep.subr.bf16.mxu0 %v370_v0  ;;  %251 = vmatprep.subr.bf16.mxu1 %v370_v0  ;;  %p338_p10 = scmp.ne.s32.totalorder %s218_s29, %s337_s8  ;;  %p343_p12 = scmp.lt.s32.totalorder %s337_s8, %s337_s8 }
  0x3c   :  { %p344_p13 = por %p343_p12, %p342_p11 }
  0x3d   :  { %244 = vmatpush3.bf16.msra.mxu0 %v266_v2  ;;  %252 = vmatpush3.bf16.msra.mxu1 %v268_v6 }
  0x3e   :  { %p345_p0 = pnand %p344_p13, %p338_p10 }
  0x3f   :  { %v74_v7 = vld [vmem:[#allocation2] sm:$0xff] }
  0x40   :  { %246 = vmatmul.mubr.msk.bf16.vlgmr.msra.gmra.mrb[0].mxu0 %vm72_vm1, %v75_v4 }
 0x113   :  { %v130_v8 = vpop.f32.mrb[0].mxu0 }
 0x114   :  { %v136_v9 = vadd.f32 %v130_v8, %v74_v7  ;;  %v247_v10 = vpop.f32.mrb[1].mxu0 }
 0x115   :  { %v133_v11 = vpop.f32.mrb[2].mxu0 }
 0x116   :  { %137 = vst.msk [vmem:[#allocation2] sm:$0xff] %vm72_vm1, %v136_v9  ;;  %v248_v12 = vpop.f32.mrb[3].mxu0 }
 0x11d   :  { %v141_v13 = vld [vmem:[#allocation2] sm:$0xff] }
 0x11e   :  { %269 = vtanh.f32 %v141_v13 }
 0x128   :  { %v270_v14 = vpop.eup %269 }
 0x129   :  { %v143_v15 = vpack.c.bf16 %v270_v14, %v270_v14 }
 0x12b   :  { %254 = vmatmul.mubr.msk.bf16.vlgmr.msra.gmra.mrb[0].mxu1 %vm72_vm1, %v143_v15 }
 0x1fe   :  { %v204_v17 = vpop.f32.mrb[0].mxu1 }
 0x1ff   :  { %v205_v18 = vadd.f32 %v231_v16, %v204_v17  ;;  %v255_v19 = vpop.f32.mrb[1].mxu1 }
 0x200   :  { %v207_v20 = vpop.f32.mrb[2].mxu1 }
 0x201   :  { %210 = vst [vmem:[#allocation9] sm:$0xff] %v205_v18  ;;  %v256_v21 = vpop.f32.mrb[3].mxu1 }
 0x202   :  { %348 = shalt.err (!%p345_p0)
}
 0x203   :  { %s349_s4 = scalar_lea.hbm %s472_s5, 128 }
 0x204   :  { %p350_p1 = scmp.ne.s32.totalorder %s472_s5, %s349_s4  ;;  %p353_p2 = scmp.lt.u32.totalorder %s349_s4, %s472_s5 }
 0x206   :  { %p355_p3 = pnand %p353_p2, %p350_p1 }
 0x208   :  { %358 = shalt.err (!%p355_p3)
}
 0x209   :  { %220 = dma.vmem_to_hbm [thread:$0]  %s218_s29, 128, %s472_s5, [#allocation5]  }
 0x20a   :  { %363 = dma.done.wait [#allocation5], 128  }
 0x20b   :  { %364 = vsyncadd [#allocation5], 4294967168 }
 0x20c   :  { %224 = vsyncpa [#allocation4], 1 }
 0x20d   :  { %225 = vsyncpa [#allocation7], 1 }
 0x20e   :  { %226 = vsyncpa [#allocation5], 1 }

</bundles_post_ra>
